<compile_context>
chip_gen: v7x
topology: tpu7x:2x2x1
jax: 0.10.0
libtpu: 0.0.40
codegen_flags: <defaults>
</compile_context>

<pallas_src>
import math
import functools

import jax
import jax.numpy as jnp
from jax.experimental import pallas as pl
from jax.experimental.pallas import tpu as pltpu


# ----------------------------- shared helpers ------------------------------ #
def _apply_dropout(x, *, dropout_p, train, seed, step):
    """Identity in eval mode; integer-domain threshold dropout in train mode."""
    if (not train) or dropout_p <= 0.0:
        return x
    pltpu.prng_seed(seed + step)
    bits = pltpu.bitcast(pltpu.prng_random_bits(x.shape), jnp.uint32)
    thr = jnp.uint32(min(int(dropout_p * (1 << 32)), (1 << 32) - 1))
    keep = bits >= thr
    # TODO(synk): cannot bit-match torch's dropout RNG stream; keep-prob is (2^32-thr)/2^32.
    return jnp.where(keep, x * jnp.float32(1.0 / (1.0 - dropout_p)), jnp.float32(0.0))


# ------------------- primary kernel: table resident in VMEM ---------------- #
def _kernel_vmem_table(ids_ref,      # [B*S] int32  (SMEM, scalar prefetch)
                       table_ref,    # [V, D]       (VMEM, resident: constant index_map)
                       pe_ref,       # [seq_tile, D] (VMEM tile, reused across inner axis)
                       out_ref,      # [1, seq_tile, D] (VMEM tile)
                       gather_buf,   # [seq_tile, D] VMEM scratch
                       *, seq_tile, seq_len, dropout_p, train, seed):
    s = pl.program_id(0)
    b = pl.program_id(1)
    step = s * pl.num_programs(1) + b
    base = b * seq_len + s * seq_tile
    V = table_ref.shape[0]

    # In-VMEM row gather — no HBM DMAs, just dynamic-sublane loads/stores.
    # TODO(synk): torch nn.Embedding raises on out-of-range ids; here they are clamped.
    @pl.loop(0, seq_tile)
    def _gather(i):
        tok = ids_ref[base + i]
        tok = jnp.minimum(jnp.maximum(tok, 0), V - 1)
        gather_buf[pl.ds(i, 1), :] = table_ref[pl.ds(tok, 1), :]

    x = gather_buf[...] + pe_ref[...]
    x = _apply_dropout(x, dropout_p=dropout_p, train=train, seed=seed, step=step)
    # reproject = nn.Identity() (init_weight is None); lane-dense full-tile store.
    out_ref[0] = x.astype(out_ref.dtype)


# ------------- fallback kernel: large vocab, HBM gather (pipelined) -------- #
def _kernel_hbm_gather(ids_ref,      # [B*S] int32  (SMEM, scalar prefetch)
                       table_hbm,    # [V, D]       (HBM, pl.ANY — no auto DMA)
                       pe_ref,       # [seq_tile, D] (VMEM tile)
                       out_ref,      # [1, seq_tile, D] (VMEM tile)
                       gather_buf,   # [2, seq_tile, D] VMEM scratch (double buffer)
                       sem,          # DMA semaphores (2,)
                       *, seq_tile, seq_len, dropout_p, train, seed):
    s = pl.program_id(0)
    b = pl.program_id(1)
    n_b = pl.num_programs(1)
    total = pl.num_programs(0) * n_b
    step = s * n_b + b                 # linear grid step (batch innermost)
    slot = step & 1
    V = table_hbm.shape[0]

    def issue(ss, bb, slt):
        base = bb * seq_len + ss * seq_tile
        # TODO(synk): up to seq_tile row DMAs are left in flight on one semaphore;
        # windowed issue would reduce DMA-queue pressure if seq_tile is very large.
        @pl.loop(0, seq_tile)
        def _start(i):
            tok = ids_ref[base + i]
            tok = jnp.minimum(jnp.maximum(tok, 0), V - 1)   # clamp OOB ids (torch raises)
            pltpu.make_async_copy(table_hbm.at[pl.ds(tok, 1), :],
                                  gather_buf.at[slt, pl.ds(i, 1), :],
                                  sem.at[slt]).start()

    # Prologue: prime this step's slot on the very first grid step.
    @pl.when(step == 0)
    def _():
        issue(s, b, slot)

    # Prefetch the NEXT grid step's rows into the other slot before draining ours,
    # hiding the gather latency behind this step's compute + output writeback.
    nxt_b = jnp.where(b + 1 < n_b, b + 1, 0)
    nxt_s = jnp.where(b + 1 < n_b, s, s + 1)

    @pl.when(step + 1 < total)
    def _():
        issue(nxt_s, nxt_b, 1 - slot)

    # Single aggregated wait: DMA semaphores count bytes and this slot's seq_tile row
    # copies sum to exactly one (seq_tile, D) tile.  Both the row copies and this wait
    # descriptor derive their sizes from gather_buf's shape/dtype, so they stay in sync.
    pltpu.make_async_copy(gather_buf.at[slot], gather_buf.at[slot], sem.at[slot]).wait()

    x = gather_buf[slot] + pe_ref[...]
    x = _apply_dropout(x, dropout_p=dropout_p, train=train, seed=seed, step=step)
    out_ref[0] = x.astype(out_ref.dtype)


# --------------------------------- wrapper --------------------------------- #
def _pick_seq_tile(S):
    # Largest sublane-friendly tile (<= 512) dividing S.  Big tiles amortize the
    # ~0.35 µs/step pipeline overhead; 512 keeps double-buffered tiles comfortably
    # inside v7x's 64 MiB VMEM while reaching ~85% of HBM roofline on v5e/v6e.
    for t in (512, 256, 128, 64, 32, 16, 8):
        if S % t == 0:
            return t
    return S


def input_position_embedding(ids, embed_table, pe, *,
                             dropout_p=0.1, train=False, seed=0, seq_tile=None,
                             vmem_table_max_bytes=16 * 1024 * 1024,
                             force_hbm_gather=False):
    """Pallas forward of InputPositionEmbedding.

    ids:         [B, S] int32
    embed_table: [V, D] float32 (VMEM-resident when it fits; HBM row-gather otherwise)
    pe:          [S, D] float32 (sinusoidal table, sliced to the sequence length)
    returns      [B, S, D] float32
    """
    B, S = ids.shape
    V, D = embed_table.shape
    assert pe.shape == (S, D)

    if seq_tile is None:
        seq_tile = _pick_seq_tile(S)
    assert S % seq_tile == 0
    assert seq_tile == S or seq_tile % 8 == 0     # sublane constraint on blocks

    num_s = S // seq_tile
    ids_flat = ids.reshape(-1).astype(jnp.int32)  # 1-D => compact SMEM padding

    itemsize = jnp.dtype(embed_table.dtype).itemsize
    table_bytes = V * D * itemsize
    tile_bytes = seq_tile * D * itemsize
    # VMEM-resident table whenever it fits a budget that is safe on every generation
    # (v7x has only 64 MiB physical VMEM per TC, so default threshold is 16 MiB).
    use_vmem_table = (not force_hbm_gather) and (table_bytes <= vmem_table_max_bytes)

    common = dict(seq_tile=seq_tile, seq_len=S,
                  dropout_p=dropout_p, train=train, seed=seed)

    if use_vmem_table:
        kernel = functools.partial(_kernel_vmem_table, **common)
        in_specs = [
            # Full-extent block + constant index_map: table DMA'd once, stays resident.
            pl.BlockSpec((V, D), lambda s, b, ids: (0, 0)),
            # pe tile: block index constant across the inner batch axis => not re-fetched.
            pl.BlockSpec((seq_tile, D), lambda s, b, ids: (s, 0)),
        ]
        scratch_shapes = [pltpu.VMEM((seq_tile, D), embed_table.dtype)]
        # Fully independent tiles: let megacore (v7x) shard both grid axes.
        dim_sem = ("parallel", "parallel")
        footprint = 2 * table_bytes + 5 * tile_bytes
    else:
        kernel = functools.partial(_kernel_hbm_gather, **common)
        in_specs = [
            pl.BlockSpec(memory_space=pl.ANY),                      # table stays in HBM
            pl.BlockSpec((seq_tile, D), lambda s, b, ids: (s, 0)),  # pe tile
        ]
        scratch_shapes = [pltpu.VMEM((2, seq_tile, D), embed_table.dtype),
                          pltpu.SemaphoreType.DMA((2,))]
        # The gather pipeline carries DMA state across grid steps, so the grid must run
        # sequentially on one core (no megacore sharding of these axes).
        dim_sem = ("arbitrary", "arbitrary")
        footprint = 6 * tile_bytes

    vmem_limit = int(min(64 << 20, max(32 << 20, footprint + (4 << 20))))

    return pl.pallas_call(
        kernel,
        out_shape=jax.ShapeDtypeStruct((B, S, D), embed_table.dtype),
        grid_spec=pltpu.PrefetchScalarGridSpec(
            num_scalar_prefetch=1,                    # token ids -> SMEM
            grid=(num_s, B),                          # batch innermost: pe reused across it
            in_specs=in_specs,
            out_specs=pl.BlockSpec((1, seq_tile, D), lambda s, b, ids: (b, s, 0)),
            scratch_shapes=scratch_shapes,
        ),
        compiler_params=pltpu.CompilerParams(
            dimension_semantics=dim_sem,
            vmem_limit_bytes=vmem_limit),
    )(ids_flat, embed_table, pe)


# ----------------------------- parameter setup ----------------------------- #
def make_sinusoidal_pe(max_len, d_model):
    """Same math as PositionalEmbedding.__init__ (glue, plain JAX)."""
    position = jnp.arange(max_len, dtype=jnp.float32)[:, None]            # [L,1]
    div_term = jnp.exp(jnp.arange(0, d_model, 2, dtype=jnp.float32)
                       * (-math.log(10000.0) / d_model))                  # [D/2]
    pe = jnp.zeros((max_len, d_model), jnp.float32)
    pe = pe.at[:, 0::2].set(jnp.sin(position * div_term))
    pe = pe.at[:, 1::2].set(jnp.cos(position * div_term))
    return pe


# ----------------------------------- main ----------------------------------- #
if __name__ == "__main__":
    # D is a multiple of 128 so output stores are lane-dense.
    B, S, D, V = 2, 16, 128, 40   # batch, seq_len, embed_dim, vocab_size

    key = jax.random.PRNGKey(0)
    k_ids, k_emb = jax.random.split(key)

    ids = jax.random.randint(k_ids, (B, S), 0, V, dtype=jnp.int32)
    embed_table = jax.random.normal(k_emb, (V, D), dtype=jnp.float32)  # nn.Embedding ~ N(0,1)
    pe = make_sinusoidal_pe(S, D)[:S]          # pe[:, :x.size(1)]

    # Pure-JAX reference for the eval-mode forward (dropout = identity).
    ref = jnp.take(embed_table, ids, axis=0) + pe[None, :, :]

    # 1) Primary path: VMEM-resident table, default (largest) seq_tile.
    out = jax.block_until_ready(
        input_position_embedding(ids, embed_table, pe, dropout_p=0.1, train=False))
    assert out.shape == (B, S, D)
    assert jnp.allclose(out, ref, atol=1e-5, rtol=1e-5), "VMEM-table path mismatch"

    # 2) Primary path with multiple sequence tiles (exercises pe reuse across batch).
    out2 = jax.block_until_ready(
        input_position_embedding(ids, embed_table, pe, dropout_p=0.1, train=False,
                                 seq_tile=8))
    assert jnp.allclose(out2, ref, atol=1e-5, rtol=1e-5), "multi-tile VMEM path mismatch"

    # 3) Large-vocab fallback: double-buffered HBM row gather.
    out3 = jax.block_until_ready(
        input_position_embedding(ids, embed_table, pe, dropout_p=0.1, train=False,
                                 seq_tile=8, force_hbm_gather=True))
    assert jnp.allclose(out3, ref, atol=1e-5, rtol=1e-5), "HBM-gather path mismatch"

    print("KERNEL_OK")
</pallas_src>

<mosaic_0001>
module attributes {stable_mosaic.version = 11 : i64} {
  func.func @_kernel_vmem_table(%arg0: i32, %arg1: i32, %arg2: memref<32xi32, #tpu.memory_space<smem>>, %arg3: memref<40x128xf32, #tpu.memory_space<vmem>>, %arg4: memref<16x128xf32, #tpu.memory_space<vmem>>, %arg5: memref<1x16x128xf32, #tpu.memory_space<vmem>>, %arg6: memref<16x128xf32, #tpu.memory_space<vmem>>) attributes {dimension_semantics = [#tpu.dimension_semantics<parallel>, #tpu.dimension_semantics<parallel>], iteration_bounds = array<i64: 1, 2>, scalar_prefetch = 1 : i64, scratch_operands = 1 : i64, tpu.core_type = #tpu.core_type<tc>, window_params = [{pipeline_mode = #tpu.pipeline_mode<synchronous>, transform_indices = @transform_0, window_bounds = array<i64: 40, 128>}, {transform_indices = @transform_1, window_bounds = array<i64: 16, 128>}, {transform_indices = @transform_2, window_bounds = array<i64: 1, 16, 128>}]} {
    %c16_i32 = arith.constant 16 : i32
    %0 = arith.muli %arg1, %c16_i32 : i32
    %c16_i32_0 = arith.constant 16 : i32
    %1 = arith.muli %arg0, %c16_i32_0 : i32
    %2 = arith.addi %0, %1 : i32
    %c0_i32 = arith.constant 0 : i32
    %c16_i32_1 = arith.constant 16 : i32
    %3 = arith.addi %c0_i32, %c16_i32_1 : i32
    %c1_i32 = arith.constant 1 : i32
    scf.for %arg7 = %c0_i32 to %3 step %c1_i32  : i32 {
      %c1_i32_9 = arith.constant 1 : i32
      %10 = arith.muli %arg7, %c1_i32_9 : i32
      %c0_i32_10 = arith.constant 0 : i32
      %11 = arith.addi %c0_i32_10, %10 : i32
      %12 = arith.addi %2, %11 : i32
      %13 = arith.index_cast %12 : i32 to index
      %14 = memref.load %arg2[%13] : memref<32xi32, #tpu.memory_space<smem>>
      %c0_i32_11 = arith.constant 0 : i32
      %15 = arith.maxsi %14, %c0_i32_11 : i32
      %c39_i32 = arith.constant 39 : i32
      %16 = arith.minsi %15, %c39_i32 : i32
      %17 = arith.index_cast %16 : i32 to index
      %c0_12 = arith.constant 0 : index
      %18 = vector.load %arg3[%17, %c0_12] : memref<40x128xf32, #tpu.memory_space<vmem>>, vector<1x128xf32>
      %19 = arith.index_cast %11 : i32 to index
      %c0_13 = arith.constant 0 : index
      %20 = vector.load %arg6[%19, %c0_13] : memref<16x128xf32, #tpu.memory_space<vmem>>, vector<1x128xf32>
      tpu.vector_store %arg6[%19, %c0_13], %18 {strides = array<i32>} : memref<16x128xf32, #tpu.memory_space<vmem>>, vector<1x128xf32>,
    }
    %c16_i32_2 = arith.constant 16 : i32
    %c0 = arith.constant 0 : index
    %c0_3 = arith.constant 0 : index
    %4 = vector.load %arg6[%c0, %c0_3] : memref<16x128xf32, #tpu.memory_space<vmem>>, vector<16x128xf32>
    %c0_4 = arith.constant 0 : index
    %c0_5 = arith.constant 0 : index
    %5 = vector.load %arg4[%c0_4, %c0_5] : memref<16x128xf32, #tpu.memory_space<vmem>>, vector<16x128xf32>
    %6 = arith.addf %4, %5 : vector<16x128xf32>
    %c0_6 = arith.constant 0 : index
    %c0_7 = arith.constant 0 : index
    %c0_8 = arith.constant 0 : index
    %7 = vector.load %arg5[%c0_6, %c0_7, %c0_8] : memref<1x16x128xf32, #tpu.memory_space<vmem>>, vector<1x16x128xf32>
    %8 = vector.shape_cast %7 : vector<1x16x128xf32> to vector<16x128xf32>
    %9 = vector.shape_cast %6 : vector<16x128xf32> to vector<1x16x128xf32>
    tpu.vector_store %arg5[%c0_6, %c0_7, %c0_8], %9 {strides = array<i32>} : memref<1x16x128xf32, #tpu.memory_space<vmem>>, vector<1x16x128xf32>,
    return
  }
  func.func @transform_0(%arg0: i32, %arg1: i32, %arg2: memref<32xi32, #tpu.memory_space<smem>>) -> (i32, i32) {
    %c0_i32 = arith.constant 0 : i32
    %c0_i32_0 = arith.constant 0 : i32
    %c0_i32_1 = arith.constant 0 : i32
    return %c0_i32, %c0_i32_0 : i32, i32
  }
  func.func @transform_1(%arg0: i32, %arg1: i32, %arg2: memref<32xi32, #tpu.memory_space<smem>>) -> (i32, i32) {
    %c0_i32 = arith.constant 0 : i32
    %c0_i32_0 = arith.constant 0 : i32
    return %arg0, %c0_i32 : i32, i32
  }
  func.func @transform_2(%arg0: i32, %arg1: i32, %arg2: memref<32xi32, #tpu.memory_space<smem>>) -> (i32, i32, i32) {
    %c0_i32 = arith.constant 0 : i32
    %c0_i32_0 = arith.constant 0 : i32
    return %arg1, %arg0, %c0_i32 : i32, i32, i32
  }
}

</mosaic_0001>

<bundles_post_ra>
// kernel: tpu_custom_call.1
= control target key start
LH: loop header
LB: loop body
LE: loop exit
PB: predicated region body
PF: predicated region fallthrough
CT: control target
= control target key end

     0   :  { %s822_s0 = inlined_call_operand.hbm [shape: s32[32], index: 0, kind: input, shape index: {}]   ;;  %s823_s1 = inlined_call_operand.hbm [shape: f32[40,128], index: 1, kind: input, shape index: {}]   ;;  %s824_s2 = inlined_call_operand.hbm [shape: f32[16,128], index: 2, kind: input, shape index: {}]   ;;  %s825_s3 = inlined_call_operand.hbm [shape: f32[2,16,128], index: 3, kind: output, shape index: {}]  }
   0x1   :  { %s428_s14 = scalar_lea.hbm %s822_s0, 16 }
   0x2   :  { %p429_p0 = scmp.ne.s32.totalorder %s822_s0, %s428_s14  ;;  %p432_p1 = scmp.lt.u32.totalorder %s428_s14, %s822_s0 }
   0x4   :  { %p434_p2 = pnand %p432_p1, %p429_p0 }
   0x6   :  { %437 = shalt.err (!%p434_p2)  }
   0x7   :  { %s592_s19 = smov [#allocation4]  }
   0x8   :  { %9 = dma.hbm_to_smem %s822_s0, 16, %s592_s19, [#allocation3] }
   0x9   :  { %550 = dma.done.wait [#allocation3], 16 }
   0xa   :  { %551 = vsyncadd [#allocation3], 4294967280 }
   0xb   :  { %11 = sfence }
   0xc   :  { %12 = vsyncpa [#allocation6], 0 }
   0xd   :  { %13 = vsyncpa [#allocation9], 0 }
   0xe   :  { %14 = vsyncpa [#allocation7], 0 }
   0xf   :  { %16 = vsyncpa [#allocation7 + $0x1], 0  ;;  %s632_s22 = smov 0   ;;  %s634_s23 = smov 0  }
  0x10   :  { %s636_s24 = smov 0   ;;  %s638_s25 = smov 0  }
  0x11   :  { %s640_s26 = smov 0   ;;  %s642_s27 = smov 0  }
  0x12 LB: > { %s316_s0 = sadd.s32 4294967295, %s586_s27   ;;  %s317_s28 = sadd.s32 4294967294, %s586_s27   ;;  %s586_s27 = sphi %s642_s27, %s22_s27   ;;  %s582_s26 = sphi %s640_s26, %s843_s26   ;;  %s578_s25 = sphi %s638_s25, %s842_s25   ;;  %s574_s24 = sphi %s636_s24, %s841_s24   ;;  %s570_s23 = sphi %s634_s23, %s840_s23   ;;  %s566_s22 = sphi %s632_s22, %s839_s22  }
  0x13   : > { %s31_s29 = sadd.s32 1, %s582_s26  ;;  %s90_s30 = sadd.s32 1, %s574_s24 }
  0x14   : > { %p32_p3 = scmp.ge.s32.totalorder %s31_s29, 2  ;;  %p100_p4 = scmp.ne.s32.totalorder %s574_s24, %s570_s23 }
  0x15   : > { %p101_p5 = scmp.eq.s32.totalorder %s316_s0, 1  ;;  %p106_p6 = scmp.ne.s32.totalorder %s570_s23, %s566_s22 }
  0x16   : > { %s845_s29 = smov (%p32_p3, %s31_s29), 0  ;;  %p107_p8 = scmp.eq.s32.totalorder %s317_s28, 1 }
  0x17   : > { %p672_p7 = por %p101_p5, %p100_p4  ;;  %s85_s5 = ssub.s32 %s582_s26, %s845_s29 }
  0x18   : > { %p318_p9 = scmp.ge.s32.totalorder %s586_s27, 1  ;;  %p88_p10 = scmp.eq.s32.totalorder %s85_s5, 0 }
  0x19   : > { %s830_s4 = scalar_select %p672_p7, 1, 0 }
  0x1a   : > { %p679_p11 = por %p107_p8, %p106_p6  ;;  %p114_p12 = scmp.lt.s32.totalorder %s586_s27, 3 }
  0x1b   : > { %s685_s7 = scalar_select %p88_p10, %s574_s24, %s90_s30  }
  0x1c   : > { %s831_s6 = scalar_select %p679_p11, 1, 0 }
  0x1d   : > { %p687_p13 = pnand %p318_p9, %p114_p12  ;;  %p691_p0 = scmp.eq.s32.totalorder %s316_s0, 0 }
  0x1e   : > { %s593_s10 = smov [#allocation5]   ;;  %s594_s13 = smov [#allocation8]  }
  0x1f   : > { %s832_s8 = scalar_select %p687_p13, 1, 0 }
  0x20   : > { %s833_s9 = scalar_select %p691_p0, 1, 0 }
  0x21   : > { %p349_p1 = pneg %p687_p13  ;;  %s126_s11 = sshll.u32 %s593_s10, 4  ;;  %s127_s11 = int_to_ptr.vmem [resolvable:$true] %s126_s11 }
  0x22   : > { %s142_s14 = sshll.u32 %s594_s13, 4  ;;  %s438_s17 = scalar_lea.hbm %s823_s1, 640  ;;  %s703_s14 = int_to_ptr.vmem [resolvable:$true] %s142_s14 }
  0x23   : > { %p699_p2 = pnand %p691_p0, %p349_p1  ;;  %p439_p3 = scmp.ne.s32.totalorder %s823_s1, %s438_s17 }
  0x24   : > { %p445_p8 = scmp.lt.u32.totalorder %s438_s17, %s823_s1 }
  0x25   : > { %p440_p4 = pneg %p699_p2 }
  0x27   : > { %p441_p5 = pnand %p440_p4, %p439_p3 }
  0x29   : > { %p442_p6 = pneg %p441_p5 }
  0x2b   : > { %p447_p9 = pnand %p445_p8, %p442_p6 }
  0x2d   : > { %450 = shalt.err (!%p447_p9)
}
  0x2e   : > { %s451_s0 = scalar_lea.vmem %s127_s11, 640  ;;  %p459_p11 = scmp.lt.s32.totalorder %s127_s11, %s127_s11 }
  0x2f   : > { %p452_p10 = scmp.ne.s32.totalorder %s127_s11, %s451_s0  ;;  %p460_p7 = scmp.lt.s32.totalorder %s451_s0, %s451_s0 }
  0x31   : > { %p454_p12 = pnand %p452_p10, %p440_p4  ;;  %p461_p0 = por %p460_p7, %p459_p11 }
  0x33   : > { %p455_p1 = pneg %p454_p12 }
  0x35   : > { %p462_p13 = pnand %p461_p0, %p455_p1 }
  0x37   : > { %465 = shalt.err (!%p462_p13)
}
  0x38   : > { %s595_s28 = smov 128   ;;  %s596_s30 = smov 8  }
  0x39   : > { %352 = dma.hbm_to_vmem [thread:$0]  (!%p699_p2), %s823_s1, 640, %s127_s11, [#allocation6], %s595_s28, %s595_s28, %s596_s30  }
  0x3a   : > { %s466_s16 = scalar_lea.hbm %s824_s2, 256 }
  0x3b   : > { %p467_p3 = scmp.ne.s32.totalorder %s824_s2, %s466_s16  ;;  %p473_p13 = scmp.lt.u32.totalorder %s466_s16, %s824_s2 }
  0x3d   : > { %p469_p7 = pnand %p467_p3, %p440_p4 }
  0x3f   : > { %p470_p11 = pneg %p469_p7 }
  0x41   : > { %p475_p0 = pnand %p473_p13, %p470_p11 }
  0x43   : > { %478 = shalt.err (!%p475_p0)
}
  0x44   : > { %s479_s11 = scalar_lea.vmem %s703_s14, 256  ;;  %p487_p9 = scmp.lt.s32.totalorder %s703_s14, %s703_s14 }
  0x45   : > { %p480_p5 = scmp.ne.s32.totalorder %s703_s14, %s479_s11  ;;  %p488_p10 = scmp.lt.s32.totalorder %s479_s11, %s479_s11 }
  0x47   : > { %p482_p6 = pnand %p480_p5, %p440_p4  ;;  %p489_p12 = por %p488_p10, %p487_p9 }
  0x49   : > { %p483_p8 = pneg %p482_p6 }
  0x4b   : > { %p490_p1 = pnand %p489_p12, %p483_p8 }
  0x4d   : > { %493 = shalt.err (!%p490_p1)
}
  0x4e   : > { %355 = dma.hbm_to_vmem [thread:$0]  (!%p699_p2), %s824_s2, 256, %s703_s14, [#allocation9], %s595_s28, %s595_s28, %s596_s30  }
  0x4f   : > { %p835_p3 = scmp.ne.s32.totalorder %s832_s8, 0 }
  0x50   : > { %p836_p7 = scmp.ne.s32.totalorder (!%p835_p3), %s833_s9, 0 }
  0x51   : > { %158 = sbr.rel (%p835_p3) target bundleno = 132 (0x84), region = 28 }
  0x58   : > { %553 = dma.done.wait (%p836_p7), [#allocation6], 640  }
  0x59   : > { %555 = vsyncadd (%p836_p7), [#allocation6], 4294966656 }
  0x5a   : > { %557 = dma.done.wait (%p836_p7), [#allocation9], 256  }
  0x5b   : > { %559 = vsyncadd (%p836_p7), [#allocation9], 4294967040  ;;  %s176_s12 = sand.u32 1, %s570_s23   ;;  %s325_s14 = sshll.u32 %s578_s25, 4 }
  0x5c   : > { %s324_s8 = sshll.u32 %s176_s12, 4  ;;  %s588_s30 = smov 0  }
  0x5d   : > { %s178_s28 = scalar_lea.vmem [#allocation10], %s324_s8 }
  0x5e LB: >> { %s190_s5 = sadd.s32 %s590_s30, %s325_s14  ;;  %s198_s13 = scalar_lea.vmem [#allocation2], %s590_s30  ;;  %s590_s30 = sphi %s588_s30, %s189_s30  }
  0x5f   : >> { %s191_s10 = sld [smem:[#allocation4 + %s190_s5]]  ;;  %s189_s30 = sadd.s32 1, %s590_s30  }
  0x60   : >> { %p186_p11 = scmp.ge.s32.totalorder %s189_s30, 16  }
  0x61   : > { %v202_v2 = vld [vmem:[#allocation8] sm:$0xff] (%p186_p11)  ;;  %s338_s15 = sshll.u32 (%p186_p11), %s578_s25, 8  ;;  %v203_v5 = vld [vmem:[#allocation8 + $0x8] sm:$0xff] (%p186_p11)  ;;  %s224_s19 = sshll.u32 (%p186_p11), %s178_s28, 4  ;;  %s772_s19 = int_to_ptr.vmem [resolvable:$true] %s224_s19 }
  0x62   : > { %s770_s18 = scalar_lea.hbm (%p186_p11), %s825_s3, %s338_s15  ;;  %s776_s20 = scalar_lea.sflag (%p186_p11), [#allocation7], %s176_s12 }
  0x63   : > { %s494_s25 = scalar_lea.vmem (%p186_p11), %s772_s19, 256  ;;  %p837_p0 = scmp.ne.s32.totalorder (%p186_p11), %s830_s4, 0 }
  0x64   : > { %p495_p13 = scmp.ne.s32.totalorder (%p186_p11), %s772_s19, %s494_s25  ;;  %s597_s11 = smov (%p186_p11), [#allocation10]  }
  0x65   : >> { %p192_p2 = scmp.gt.s32.totalorder %s191_s10, 0  ;;  %p326_p4 = scmp.lt.s32.totalorder %s191_s10, 39 }
  0x66   : > { %188 = sbr.rel (!%p186_p11) target bundleno = 94 (0x5e), region = 79  ;;  %p496_p5 = pnand (%p186_p11), %p495_p13, %p837_p0 }
  0x67   : >> { %s847_s10 = smov (!%p192_p2, %s191_s10), 0  ;;  %s498_s21 = sshll.u32 (%p186_p11), %s597_s11, 4  ;;  %s499_s21 = int_to_ptr.vmem [resolvable:$false] %s498_s21 }
  0x68   : >> { %s849_s10 = smov (!%p326_p4, %s847_s10), 39  ;;  %p497_p6 = pneg (%p186_p11), %p496_p5 }
  0x69   : >> { %s196_s9 = scalar_lea.vmem [#allocation5], %s849_s10  ;;  %s500_s0 = scalar_lea.vmem (%p186_p11), %s499_s21, 512 }
  0x6a   : >> { %v197_v0 = vld [vmem:[%s196_s9] sm:$0x1]  ;;  %p501_p8 = scmp.lt.s32.totalorder (%p186_p11), %s772_s19, %s499_s21  ;;  %p502_p9 = scmp.lt.s32.totalorder (%p186_p11), %s500_s0, %s494_s25 }
  0x6b   : >> { %199 = vst [vmem:[%s198_s13] sm:$0x1] %v197_v0 }
  0x6c   : > { %p503_p10 = por (%p186_p11), %p502_p9, %p501_p8 }
  0x6e   : > { %p504_p12 = pnand %p503_p10, %p497_p6 }
  0x72   : > { %v200_v1 = vld [vmem:[#allocation2] sm:$0xff]  ;;  %v201_v3 = vld [vmem:[#allocation2 + $0x8] sm:$0xff] }
  0x73   : > { %v204_v4 = vadd.f32 %v202_v2, %v200_v1  ;;  %v205_v6 = vadd.f32 %v203_v5, %v201_v3 }
  0x75   : > { %206 = vst [vmem:[%s178_s28] sm:$0xff] %v204_v4  ;;  %207 = vst [vmem:[%s178_s28 + $0x8] sm:$0xff] %v205_v6 }
  0x76   : > { %507 = shalt.err (!%p504_p12)
}
  0x77   : > { %s508_s12 = scalar_lea.hbm %s770_s18, 256  ;;  %s512_s28 = scalar_lea.hbm %s825_s3, 512 }
  0x78   : > { %p509_p1 = scmp.ne.s32.totalorder %s770_s18, %s508_s12  ;;  %p513_p2 = scmp.lt.u32.totalorder %s770_s18, %s825_s3 }
  0x79   : > { %p514_p4 = scmp.lt.u32.totalorder %s512_s28, %s508_s12  ;;  %p516_p13 = scmp.lt.u32.totalorder %s508_s12, %s770_s18 }
  0x7a   : > { %p510_p3 = pnand %p509_p1, %p837_p0 }
  0x7b   : > { %p515_p11 = por %p514_p4, %p513_p2 }
  0x7c   : > { %p511_p7 = pneg %p510_p3 }
  0x7d   : > { %p517_p5 = por %p516_p13, %p515_p11 }
  0x7f   : > { %p518_p6 = pnand %p517_p5, %p511_p7 }
  0x81   : > { %521 = shalt.err (!%p518_p6)
}
  0x82   : > { %s598_s10 = smov 128   ;;  %s599_s9 = smov 8  }
  0x83   : > { %347 = dma.vmem_to_hbm [thread:$0]  (%p837_p0), %s772_s19, 256, %s770_s18, %s776_s20, %s598_s10, %s598_s10, %s599_s9  }
  0x84 PF: > { %p364_p8 = scmp.ge.s32.totalorder %s586_s27, 2  ;;  %s239_s13 = sand.u32 1, %s566_s22  }
  0x85   : > { %p838_p9 = scmp.ne.s32.totalorder %s831_s6, 0  ;;  %s240_s15 = scalar_lea.sflag [#allocation7], %s239_s13 }
  0x87   : > { %p357_p10 = pnand %p364_p8, %p838_p9 }
  0x89   : > { %561 = dma.done.wait (!%p357_p10), %s240_s15, 256  }
  0x8a   : > { %563 = vsyncadd (!%p357_p10), %s240_s15, 4294967040  ;;  %s22_s27 = sadd.s32 1, %s586_s27   ;;  %s839_s22 = smov %s570_s23 }
  0x8b   : > { %p19_p12 = scmp.ge.s32.totalorder %s22_s27, 4   ;;  %s840_s23 = smov %s574_s24 }
  0x8c   : > { %s841_s24 = smov %s685_s7  ;;  %s842_s25 = smov %s582_s26 }
  0x8d   : > { %s843_s26 = smov %s845_s29  ;;  %21 = sbr.rel (!%p19_p12) target bundleno = 18 (0x12), region = 90 }
  0x94   :  { %245 = vsyncpa [#allocation6], 1 }
  0x95   :  { %247 = vsyncpa [#allocation6 + $0x1], 1 }
  0x96   :  { %248 = vsyncpa [#allocation9], 1 }
  0x97   :  { %249 = vsyncpa [#allocation7], 1 }
  0x98   :  { %251 = vsyncpa [#allocation7 + $0x1], 1 }

</bundles_post_ra>
